<compile_context>
chip_gen: v6e
topology: v6e:2x2x1
jax: 0.10.0
libtpu: 0.0.40
codegen_flags: <defaults>
</compile_context>

<pallas_src>
import numpy as np

import jax
import jax.numpy as jnp
from jax import lax
from jax.experimental import pallas as pl
from jax.experimental.pallas import tpu as pltpu


# ----------------------------------------------------------------------------
# Fused kernel
# ----------------------------------------------------------------------------

def _lane_shift(v, s):
    """Cyclic shift along the last axis: result[..., i] = v[..., (i + s) % n].

    Two static slices + a lane concatenate (XLU/relayout work inside VMEM,
    no HBM traffic); equivalent to a pltpu.roll but with an unambiguous
    shift direction.
    """
    n = v.shape[-1]
    s = s % n
    if s == 0:
        return v
    return jnp.concatenate([v[:, s:], v[:, :s]], axis=-1)


def _make_fused_kernel(*, ks, W, has_expand, add_residual):
    """Builds the fused expand->depthwise->project kernel body."""
    pad = ks // 2

    def kernel(*refs):
        if has_expand:
            (x_ref, m_ref, w1_ref, b1_ref, wd_ref, bd_ref,
             w2_ref, b2_ref, o_ref) = refs
        else:
            (x_ref, m_ref, wd_ref, bd_ref, w2_ref, b2_ref, o_ref) = refs

        x = x_ref[0]                                         # (Cin, HWp)

        # ---- expand 1x1 conv + BN + ReLU (BN scale folded into w1) --------
        if has_expand:
            h = jnp.dot(w1_ref[...], x, preferred_element_type=jnp.float32)
            h = jnp.maximum(h + b1_ref[...], 0.0)            # (Chid, HWp) f32
        else:
            h = x.astype(jnp.float32)                        # Chid == Cin

        # ---- depthwise ks x ks conv (stride 1, pad ks//2) + BN + ReLU ------
        # Flat-HW layout: tap (kh, kw) is a cyclic lane shift of `h`; the
        # precomputed 0/1 masks zero out-of-image (halo) contributions, so no
        # padded copy of the hidden tensor is ever materialized.
        acc = None
        for kh in range(ks):
            for kw in range(ks):
                t = kh * ks + kw
                shift = (kh - pad) * W + (kw - pad)
                tap = _lane_shift(h, shift)
                if shift != 0:                 # center tap is always in-image
                    tap = tap * m_ref[t:t + 1, :]            # (1, HWp) mask
                term = tap * wd_ref[:, t:t + 1]              # (Chid, 1) weight
                acc = term if acc is None else acc + term
        dw = jnp.maximum(acc + bd_ref[...], 0.0)             # (Chid, HWp) f32

        # ---- project 1x1 conv + BN (+ fused residual) ----------------------
        y = jnp.dot(w2_ref[...], dw.astype(w2_ref.dtype),
                    preferred_element_type=jnp.float32)
        y = y + b2_ref[...]
        if add_residual:
            y = y + x.astype(jnp.float32)
        o_ref[0] = y.astype(o_ref.dtype)

    return kernel


# ----------------------------------------------------------------------------
# Wrapper
# ----------------------------------------------------------------------------

def fold_bn(gamma, beta, mean, var, eps=1e-5):
    """Fold inference-mode BatchNorm into a per-channel scale/bias."""
    s = gamma / jnp.sqrt(var + eps)
    return s, beta - mean * s


def _tap_masks(h, w, hwp, ks):
    """0/1 float validity mask per depthwise tap over the padded flat H*W axis."""
    pad = ks // 2
    hh, ww = np.meshgrid(np.arange(h), np.arange(w), indexing="ij")
    hh = hh.reshape(-1)
    ww = ww.reshape(-1)
    m = np.zeros((ks * ks, hwp), np.float32)
    for kh in range(ks):
        for kw in range(ks):
            dh, dw = kh - pad, kw - pad
            valid = ((hh + dh >= 0) & (hh + dh < h) &
                     (ww + dw >= 0) & (ww + dw < w))
            m[kh * ks + kw, :h * w] = valid.astype(np.float32)
    return jnp.asarray(m)


def _vmem_limit_bytes():
    """Generation-aware scoped-VMEM budget (leave headroom on v7x's 64 MiB)."""
    try:
        cap = int(pltpu.get_tpu_info().vmem_capacity_bytes)
    except Exception:
        cap = 64 << 20
    return max(32 << 20, min((cap * 3) // 4, 100 << 20))


def inverted_residual_forward(x, params, *, ks, stride, expand_ratio):
    """Forward pass of InvertedResidual (eval-mode BN, ReLU), x in NCHW."""
    n, inp, hdim, wdim = x.shape
    oup = params["w2"].shape[0]
    hidden = params["wd"].shape[0]
    has_expand = expand_ratio != 1
    use_res = (stride == 1) and (inp == oup)
    cdtype = x.dtype

    # ---- fold BN into conv weights (scale) + per-channel f32 bias ----------
    weights = []
    if has_expand:
        s1, b1 = fold_bn(params["g1"], params["b1"], params["m1"], params["v1"])
        w1f = (params["w1"].astype(jnp.float32) * s1[:, None]).astype(cdtype)
        weights += [w1f, b1.reshape(hidden, 1).astype(jnp.float32)]
    sd, bd = fold_bn(params["gd"], params["bd"], params["md"], params["vd"])
    wdf = (params["wd"].reshape(hidden, ks * ks).astype(jnp.float32)
           * sd[:, None]).astype(jnp.float32)
    weights += [wdf, bd.reshape(hidden, 1).astype(jnp.float32)]
    s2, b2 = fold_bn(params["g2"], params["b2"], params["m2"], params["v2"])
    w2f = (params["w2"].astype(jnp.float32) * s2[:, None]).astype(cdtype)
    weights += [w2f, b2.reshape(oup, 1).astype(jnp.float32)]

    # ---- flatten H*W onto lanes, padded to a multiple of 128 ---------------
    hw = hdim * wdim
    hwp = ((hw + 127) // 128) * 128
    x3 = x.reshape(n, inp, hw)                     # contiguous reshape, free
    if hwp != hw:
        x3 = jnp.pad(x3, ((0, 0), (0, 0), (0, hwp - hw)))
    masks = _tap_masks(hdim, wdim, hwp, ks)

    kernel = _make_fused_kernel(ks=ks, W=wdim, has_expand=has_expand,
                                add_residual=use_res)

    in_specs = [pl.BlockSpec((1, inp, hwp), lambda b: (b, 0, 0)),
                pl.BlockSpec((ks * ks, hwp), lambda b: (0, 0))]
    if has_expand:
        in_specs += [pl.BlockSpec((hidden, inp), lambda b: (0, 0)),
                     pl.BlockSpec((hidden, 1), lambda b: (0, 0))]
    in_specs += [pl.BlockSpec((hidden, ks * ks), lambda b: (0, 0)),
                 pl.BlockSpec((hidden, 1), lambda b: (0, 0)),
                 pl.BlockSpec((oup, hidden), lambda b: (0, 0)),
                 pl.BlockSpec((oup, 1), lambda b: (0, 0))]

    out = pl.pallas_call(
        kernel,
        out_shape=jax.ShapeDtypeStruct((n, oup, hwp), cdtype),
        grid=(n,),
        in_specs=in_specs,
        out_specs=pl.BlockSpec((1, oup, hwp), lambda b: (b, 0, 0)),
        compiler_params=pltpu.CompilerParams(
            dimension_semantics=("parallel",),
            vmem_limit_bytes=_vmem_limit_bytes()),
    )(x3, masks, *weights)

    if hwp != hw:
        out = out[:, :, :hw]
    out = out.reshape(n, oup, hdim, wdim)
    if stride > 1:
        # Stride-s depthwise output == stride-1 output subsampled (pad=ks//2),
        # and the 1x1 project conv / BN commute with the subsample.
        # TODO(synk): compute only the strided rows/cols in-kernel.
        out = out[:, :, ::stride, ::stride]
    return out


# ----------------------------------------------------------------------------
# Plain-JAX reference (XLA convs) for correctness checking
# ----------------------------------------------------------------------------

def _ref_conv_bn(y, w4, scale, bias, *, stride=1, pad=0, groups=1, relu=False):
    dn = ("NCHW", "OIHW", "NCHW")
    y = lax.conv_general_dilated(
        y, w4, (stride, stride), [(pad, pad), (pad, pad)],
        dimension_numbers=dn, feature_group_count=groups,
        precision=lax.Precision.HIGHEST)
    y = y * scale[None, :, None, None] + bias[None, :, None, None]
    if relu:
        y = jnp.maximum(y, 0.0)
    return y


def ref_inverted_residual(x, p, *, ks, stride, expand_ratio):
    inp = x.shape[1]
    oup = p["w2"].shape[0]
    use_res = (stride == 1) and (inp == oup)
    y = x
    if expand_ratio != 1:
        s, b = fold_bn(p["g1"], p["b1"], p["m1"], p["v1"])
        y = _ref_conv_bn(y, p["w1"][:, :, None, None], s, b, relu=True)
    s, b = fold_bn(p["gd"], p["bd"], p["md"], p["vd"])
    hidden = p["wd"].shape[0]
    y = _ref_conv_bn(y, p["wd"][:, None, :, :], s, b, stride=stride,
                     pad=ks // 2, groups=hidden, relu=True)
    s, b = fold_bn(p["g2"], p["b2"], p["m2"], p["v2"])
    y = _ref_conv_bn(y, p["w2"][:, :, None, None], s, b, relu=False)
    if use_res:
        y = y + x
    return y


# ----------------------------------------------------------------------------
# Demo / self-test
# ----------------------------------------------------------------------------

if __name__ == "__main__":
    root = jax.random.PRNGKey(0)

    def bn_params(k, c):
        k1, k2, k3, k4 = jax.random.split(k, 4)
        return (jax.random.uniform(k1, (c,), minval=0.5, maxval=1.5),  # gamma
                jax.random.normal(k2, (c,)) * 0.1,                     # beta
                jax.random.normal(k3, (c,)) * 0.1,                     # mean
                jax.random.uniform(k4, (c,), minval=0.5, maxval=1.5))  # var

    def make_params(k, inp, oup, hidden, ks, expand_ratio):
        kk = jax.random.split(k, 6)
        p = {}
        if expand_ratio != 1:
            p["w1"] = jax.random.normal(kk[0], (hidden, inp), jnp.float32) * 0.3
            p["g1"], p["b1"], p["m1"], p["v1"] = bn_params(kk[1], hidden)
        p["wd"] = jax.random.normal(kk[2], (hidden, ks, ks), jnp.float32) * 0.3
        p["gd"], p["bd"], p["md"], p["vd"] = bn_params(kk[3], hidden)
        p["w2"] = jax.random.normal(kk[4], (oup, hidden), jnp.float32) * 0.3
        p["g2"], p["b2"], p["m2"], p["v2"] = bn_params(kk[5], oup)
        return p

    # (name, n, inp, oup, spatial, ks, stride, expand_ratio, dtype, atol)
    cases = [
        ("stride1_residual", 2, 4, 4, 16, 3, 1, 2, jnp.float32, 2e-2),
        ("stride2",          2, 4, 8, 16, 3, 2, 2, jnp.float32, 2e-2),
        ("expand1_residual", 2, 8, 8, 16, 3, 1, 1, jnp.float32, 2e-2),
        ("lane_pad_hw100",   2, 3, 6, 10, 3, 1, 2, jnp.float32, 2e-2),
        ("stride1_bf16",     2, 4, 4, 16, 3, 1, 2, jnp.bfloat16, 3e-1),
    ]

    for i, (name, n, inp, oup, sp, ks, stride, er, dtype, atol) in enumerate(cases):
        kx, kp = jax.random.split(jax.random.fold_in(root, i))
        hidden = int(round(inp * er))
        x = jax.random.normal(kx, (n, inp, sp, sp), dtype=jnp.float32)
        x = x.astype(dtype)
        params = make_params(kp, inp, oup, hidden, ks, er)

        y = inverted_residual_forward(x, params, ks=ks, stride=stride,
                                      expand_ratio=er)
        y = jax.block_until_ready(y)

        y_ref = ref_inverted_residual(x.astype(jnp.float32), params,
                                      ks=ks, stride=stride, expand_ratio=er)

        assert y.shape == y_ref.shape, f"{name}: shape {y.shape} vs {y_ref.shape}"
        assert y.dtype == dtype, f"{name}: dtype {y.dtype}"
        err = float(jnp.max(jnp.abs(y.astype(jnp.float32) - y_ref)))
        assert err < atol, f"{name}: max abs err {err} >= {atol}"

    print("KERNEL_OK")
</pallas_src>

<mosaic_0001>
module attributes {stable_mosaic.version = 11 : i64} {
  func.func @kernel(%arg0: i32, %arg1: memref<1x4x256xf32, #tpu.memory_space<vmem>>, %arg2: memref<9x256xf32, #tpu.memory_space<vmem>>, %arg3: memref<8x4xf32, #tpu.memory_space<vmem>>, %arg4: memref<8x1xf32, #tpu.memory_space<vmem>>, %arg5: memref<8x9xf32, #tpu.memory_space<vmem>>, %arg6: memref<8x1xf32, #tpu.memory_space<vmem>>, %arg7: memref<4x8xf32, #tpu.memory_space<vmem>>, %arg8: memref<4x1xf32, #tpu.memory_space<vmem>>, %arg9: memref<1x4x256xf32, #tpu.memory_space<vmem>>) attributes {dimension_semantics = [#tpu.dimension_semantics<parallel>], iteration_bounds = array<i64: 2>, scalar_prefetch = 0 : i64, scratch_operands = 0 : i64, tpu.core_type = #tpu.core_type<tc>, window_params = [{transform_indices = @transform_0, window_bounds = array<i64: 1, 4, 256>}, {pipeline_mode = #tpu.pipeline_mode<synchronous>, transform_indices = @transform_1, window_bounds = array<i64: 9, 256>}, {pipeline_mode = #tpu.pipeline_mode<synchronous>, transform_indices = @transform_2, window_bounds = array<i64: 8, 4>}, {pipeline_mode = #tpu.pipeline_mode<synchronous>, transform_indices = @transform_3, window_bounds = array<i64: 8, 1>}, {pipeline_mode = #tpu.pipeline_mode<synchronous>, transform_indices = @transform_4, window_bounds = array<i64: 8, 9>}, {pipeline_mode = #tpu.pipeline_mode<synchronous>, transform_indices = @transform_5, window_bounds = array<i64: 8, 1>}, {pipeline_mode = #tpu.pipeline_mode<synchronous>, transform_indices = @transform_6, window_bounds = array<i64: 4, 8>}, {pipeline_mode = #tpu.pipeline_mode<synchronous>, transform_indices = @transform_7, window_bounds = array<i64: 4, 1>}, {transform_indices = @transform_8, window_bounds = array<i64: 1, 4, 256>}]} {
    %c0 = arith.constant 0 : index
    %c0_0 = arith.constant 0 : index
    %c0_1 = arith.constant 0 : index
    %0 = vector.load %arg1[%c0, %c0_0, %c0_1] : memref<1x4x256xf32, #tpu.memory_space<vmem>>, vector<1x4x256xf32>
    %1 = vector.shape_cast %0 : vector<1x4x256xf32> to vector<4x256xf32>
    %c0_2 = arith.constant 0 : index
    %c0_3 = arith.constant 0 : index
    %2 = vector.load %arg3[%c0_2, %c0_3] : memref<8x4xf32, #tpu.memory_space<vmem>>, vector<8x4xf32>
    %cst = arith.constant dense<0.000000e+00> : vector<8x256xf32>
    %3 = tpu.matmul %2, %1, %cst {dimension_numbers = #tpu.dot_dimension_numbers<[1], [0], [0], [1], [0, 0, 1, 1], [], []>} : vector<8x4xf32>, vector<4x256xf32>, vector<8x256xf32> -> vector<8x256xf32>
    %c0_4 = arith.constant 0 : index
    %c0_5 = arith.constant 0 : index
    %4 = vector.load %arg4[%c0_4, %c0_5] : memref<8x1xf32, #tpu.memory_space<vmem>>, vector<8x1xf32>
    %5 = vector.broadcast %4 : vector<8x1xf32> to vector<8x256xf32>
    %6 = arith.addf %3, %5 : vector<8x256xf32>
    %cst_6 = arith.constant 0.000000e+00 : f32
    %7 = vector.broadcast %cst_6 : f32 to vector<8x256xf32>
    %8 = arith.maximumf %6, %7 : vector<8x256xf32>
    %9 = vector.extract_strided_slice %8 {offsets = [0, 239], sizes = [8, 17], strides = [1, 1]} : vector<8x256xf32> to vector<8x17xf32>
    %10 = vector.extract_strided_slice %8 {offsets = [0, 0], sizes = [8, 239], strides = [1, 1]} : vector<8x256xf32> to vector<8x239xf32>
    %11 = tpu.concatenate %9, %10 in 1 : vector<8x17xf32>, vector<8x239xf32> -> vector<8x256xf32>
    %c0_7 = arith.constant 0 : index
    %c0_8 = arith.constant 0 : index
    %12 = vector.load %arg2[%c0_7, %c0_8] : memref<9x256xf32, #tpu.memory_space<vmem>>, vector<1x256xf32>
    %13 = vector.broadcast %12 : vector<1x256xf32> to vector<8x256xf32>
    %14 = arith.mulf %11, %13 : vector<8x256xf32>
    %c0_9 = arith.constant 0 : index
    %c0_10 = arith.constant 0 : index
    %15 = vector.load %arg5[%c0_9, %c0_10] : memref<8x9xf32, #tpu.memory_space<vmem>>, vector<8x1xf32>
    %16 = vector.broadcast %15 : vector<8x1xf32> to vector<8x256xf32>
    %17 = arith.mulf %14, %16 : vector<8x256xf32>
    %18 = vector.extract_strided_slice %8 {offsets = [0, 240], sizes = [8, 16], strides = [1, 1]} : vector<8x256xf32> to vector<8x16xf32>
    %19 = vector.extract_strided_slice %8 {offsets = [0, 0], sizes = [8, 240], strides = [1, 1]} : vector<8x256xf32> to vector<8x240xf32>
    %20 = tpu.concatenate %18, %19 in 1 : vector<8x16xf32>, vector<8x240xf32> -> vector<8x256xf32>
    %c1 = arith.constant 1 : index
    %c0_11 = arith.constant 0 : index
    %21 = vector.load %arg2[%c1, %c0_11] : memref<9x256xf32, #tpu.memory_space<vmem>>, vector<1x256xf32>
    %22 = vector.broadcast %21 : vector<1x256xf32> to vector<8x256xf32>
    %23 = arith.mulf %20, %22 : vector<8x256xf32>
    %c0_12 = arith.constant 0 : index
    %c1_13 = arith.constant 1 : index
    %24 = vector.load %arg5[%c0_12, %c1_13] : memref<8x9xf32, #tpu.memory_space<vmem>>, vector<8x1xf32>
    %25 = vector.broadcast %24 : vector<8x1xf32> to vector<8x256xf32>
    %26 = arith.mulf %23, %25 : vector<8x256xf32>
    %27 = arith.addf %17, %26 : vector<8x256xf32>
    %28 = vector.extract_strided_slice %8 {offsets = [0, 241], sizes = [8, 15], strides = [1, 1]} : vector<8x256xf32> to vector<8x15xf32>
    %29 = vector.extract_strided_slice %8 {offsets = [0, 0], sizes = [8, 241], strides = [1, 1]} : vector<8x256xf32> to vector<8x241xf32>
    %30 = tpu.concatenate %28, %29 in 1 : vector<8x15xf32>, vector<8x241xf32> -> vector<8x256xf32>
    %c2 = arith.constant 2 : index
    %c0_14 = arith.constant 0 : index
    %31 = vector.load %arg2[%c2, %c0_14] : memref<9x256xf32, #tpu.memory_space<vmem>>, vector<1x256xf32>
    %32 = vector.broadcast %31 : vector<1x256xf32> to vector<8x256xf32>
    %33 = arith.mulf %30, %32 : vector<8x256xf32>
    %c0_15 = arith.constant 0 : index
    %c2_16 = arith.constant 2 : index
    %34 = vector.load %arg5[%c0_15, %c2_16] : memref<8x9xf32, #tpu.memory_space<vmem>>, vector<8x1xf32>
    %35 = vector.broadcast %34 : vector<8x1xf32> to vector<8x256xf32>
    %36 = arith.mulf %33, %35 : vector<8x256xf32>
    %37 = arith.addf %27, %36 : vector<8x256xf32>
    %38 = vector.extract_strided_slice %8 {offsets = [0, 255], sizes = [8, 1], strides = [1, 1]} : vector<8x256xf32> to vector<8x1xf32>
    %39 = vector.extract_strided_slice %8 {offsets = [0, 0], sizes = [8, 255], strides = [1, 1]} : vector<8x256xf32> to vector<8x255xf32>
    %40 = tpu.concatenate %38, %39 in 1 : vector<8x1xf32>, vector<8x255xf32> -> vector<8x256xf32>
    %c3 = arith.constant 3 : index
    %c0_17 = arith.constant 0 : index
    %41 = vector.load %arg2[%c3, %c0_17] : memref<9x256xf32, #tpu.memory_space<vmem>>, vector<1x256xf32>
    %42 = vector.broadcast %41 : vector<1x256xf32> to vector<8x256xf32>
    %43 = arith.mulf %40, %42 : vector<8x256xf32>
    %c0_18 = arith.constant 0 : index
    %c3_19 = arith.constant 3 : index
    %44 = vector.load %arg5[%c0_18, %c3_19] : memref<8x9xf32, #tpu.memory_space<vmem>>, vector<8x1xf32>
    %45 = vector.broadcast %44 : vector<8x1xf32> to vector<8x256xf32>
    %46 = arith.mulf %43, %45 : vector<8x256xf32>
    %47 = arith.addf %37, %46 : vector<8x256xf32>
    %c0_20 = arith.constant 0 : index
    %c4 = arith.constant 4 : index
    %48 = vector.load %arg5[%c0_20, %c4] : memref<8x9xf32, #tpu.memory_space<vmem>>, vector<8x1xf32>
    %49 = vector.broadcast %48 : vector<8x1xf32> to vector<8x256xf32>
    %50 = arith.mulf %8, %49 : vector<8x256xf32>
    %51 = arith.addf %47, %50 : vector<8x256xf32>
    %52 = vector.extract_strided_slice %8 {offsets = [0, 1], sizes = [8, 255], strides = [1, 1]} : vector<8x256xf32> to vector<8x255xf32>
    %53 = vector.extract_strided_slice %8 {offsets = [0, 0], sizes = [8, 1], strides = [1, 1]} : vector<8x256xf32> to vector<8x1xf32>
    %54 = tpu.concatenate %52, %53 in 1 : vector<8x255xf32>, vector<8x1xf32> -> vector<8x256xf32>
    %c5 = arith.constant 5 : index
    %c0_21 = arith.constant 0 : index
    %55 = vector.load %arg2[%c5, %c0_21] : memref<9x256xf32, #tpu.memory_space<vmem>>, vector<1x256xf32>
    %56 = vector.broadcast %55 : vector<1x256xf32> to vector<8x256xf32>
    %57 = arith.mulf %54, %56 : vector<8x256xf32>
    %c0_22 = arith.constant 0 : index
    %c5_23 = arith.constant 5 : index
    %58 = vector.load %arg5[%c0_22, %c5_23] : memref<8x9xf32, #tpu.memory_space<vmem>>, vector<8x1xf32>
    %59 = vector.broadcast %58 : vector<8x1xf32> to vector<8x256xf32>
    %60 = arith.mulf %57, %59 : vector<8x256xf32>
    %61 = arith.addf %51, %60 : vector<8x256xf32>
    %62 = vector.extract_strided_slice %8 {offsets = [0, 15], sizes = [8, 241], strides = [1, 1]} : vector<8x256xf32> to vector<8x241xf32>
    %63 = vector.extract_strided_slice %8 {offsets = [0, 0], sizes = [8, 15], strides = [1, 1]} : vector<8x256xf32> to vector<8x15xf32>
    %64 = tpu.concatenate %62, %63 in 1 : vector<8x241xf32>, vector<8x15xf32> -> vector<8x256xf32>
    %c6 = arith.constant 6 : index
    %c0_24 = arith.constant 0 : index
    %65 = vector.load %arg2[%c6, %c0_24] : memref<9x256xf32, #tpu.memory_space<vmem>>, vector<1x256xf32>
    %66 = vector.broadcast %65 : vector<1x256xf32> to vector<8x256xf32>
    %67 = arith.mulf %64, %66 : vector<8x256xf32>
    %c0_25 = arith.constant 0 : index
    %c6_26 = arith.constant 6 : index
    %68 = vector.load %arg5[%c0_25, %c6_26] : memref<8x9xf32, #tpu.memory_space<vmem>>, vector<8x1xf32>
    %69 = vector.broadcast %68 : vector<8x1xf32> to vector<8x256xf32>
    %70 = arith.mulf %67, %69 : vector<8x256xf32>
    %71 = arith.addf %61, %70 : vector<8x256xf32>
    %72 = vector.extract_strided_slice %8 {offsets = [0, 16], sizes = [8, 240], strides = [1, 1]} : vector<8x256xf32> to vector<8x240xf32>
    %73 = vector.extract_strided_slice %8 {offsets = [0, 0], sizes = [8, 16], strides = [1, 1]} : vector<8x256xf32> to vector<8x16xf32>
    %74 = tpu.concatenate %72, %73 in 1 : vector<8x240xf32>, vector<8x16xf32> -> vector<8x256xf32>
    %c7 = arith.constant 7 : index
    %c0_27 = arith.constant 0 : index
    %75 = vector.load %arg2[%c7, %c0_27] : memref<9x256xf32, #tpu.memory_space<vmem>>, vector<1x256xf32>
    %76 = vector.broadcast %75 : vector<1x256xf32> to vector<8x256xf32>
    %77 = arith.mulf %74, %76 : vector<8x256xf32>
    %c0_28 = arith.constant 0 : index
    %c7_29 = arith.constant 7 : index
    %78 = vector.load %arg5[%c0_28, %c7_29] : memref<8x9xf32, #tpu.memory_space<vmem>>, vector<8x1xf32>
    %79 = vector.broadcast %78 : vector<8x1xf32> to vector<8x256xf32>
    %80 = arith.mulf %77, %79 : vector<8x256xf32>
    %81 = arith.addf %71, %80 : vector<8x256xf32>
    %82 = vector.extract_strided_slice %8 {offsets = [0, 17], sizes = [8, 239], strides = [1, 1]} : vector<8x256xf32> to vector<8x239xf32>
    %83 = vector.extract_strided_slice %8 {offsets = [0, 0], sizes = [8, 17], strides = [1, 1]} : vector<8x256xf32> to vector<8x17xf32>
    %84 = tpu.concatenate %82, %83 in 1 : vector<8x239xf32>, vector<8x17xf32> -> vector<8x256xf32>
    %c8 = arith.constant 8 : index
    %c0_30 = arith.constant 0 : index
    %85 = vector.load %arg2[%c8, %c0_30] : memref<9x256xf32, #tpu.memory_space<vmem>>, vector<1x256xf32>
    %86 = vector.broadcast %85 : vector<1x256xf32> to vector<8x256xf32>
    %87 = arith.mulf %84, %86 : vector<8x256xf32>
    %c0_31 = arith.constant 0 : index
    %c8_32 = arith.constant 8 : index
    %88 = vector.load %arg5[%c0_31, %c8_32] : memref<8x9xf32, #tpu.memory_space<vmem>>, vector<8x1xf32>
    %89 = vector.broadcast %88 : vector<8x1xf32> to vector<8x256xf32>
    %90 = arith.mulf %87, %89 : vector<8x256xf32>
    %91 = arith.addf %81, %90 : vector<8x256xf32>
    %c0_33 = arith.constant 0 : index
    %c0_34 = arith.constant 0 : index
    %92 = vector.load %arg6[%c0_33, %c0_34] : memref<8x1xf32, #tpu.memory_space<vmem>>, vector<8x1xf32>
    %93 = vector.broadcast %92 : vector<8x1xf32> to vector<8x256xf32>
    %94 = arith.addf %91, %93 : vector<8x256xf32>
    %cst_35 = arith.constant 0.000000e+00 : f32
    %95 = vector.broadcast %cst_35 : f32 to vector<8x256xf32>
    %96 = arith.maximumf %94, %95 : vector<8x256xf32>
    %c0_36 = arith.constant 0 : index
    %c0_37 = arith.constant 0 : index
    %97 = vector.load %arg7[%c0_36, %c0_37] : memref<4x8xf32, #tpu.memory_space<vmem>>, vector<4x8xf32>
    %cst_38 = arith.constant dense<0.000000e+00> : vector<4x256xf32>
    %98 = tpu.matmul %97, %96, %cst_38 {dimension_numbers = #tpu.dot_dimension_numbers<[1], [0], [0], [1], [0, 0, 1, 1], [], []>} : vector<4x8xf32>, vector<8x256xf32>, vector<4x256xf32> -> vector<4x256xf32>
    %c0_39 = arith.constant 0 : index
    %c0_40 = arith.constant 0 : index
    %99 = vector.load %arg8[%c0_39, %c0_40] : memref<4x1xf32, #tpu.memory_space<vmem>>, vector<4x1xf32>
    %100 = vector.broadcast %99 : vector<4x1xf32> to vector<4x256xf32>
    %101 = arith.addf %98, %100 : vector<4x256xf32>
    %102 = arith.addf %101, %1 : vector<4x256xf32>
    %c0_41 = arith.constant 0 : index
    %c0_42 = arith.constant 0 : index
    %c0_43 = arith.constant 0 : index
    %103 = vector.load %arg9[%c0_41, %c0_42, %c0_43] : memref<1x4x256xf32, #tpu.memory_space<vmem>>, vector<1x4x256xf32>
    %104 = vector.shape_cast %103 : vector<1x4x256xf32> to vector<4x256xf32>
    %105 = vector.shape_cast %102 : vector<4x256xf32> to vector<1x4x256xf32>
    tpu.vector_store %arg9[%c0_41, %c0_42, %c0_43], %105 {strides = array<i32>} : memref<1x4x256xf32, #tpu.memory_space<vmem>>, vector<1x4x256xf32>,
    return
  }
  func.func @transform_0(%arg0: i32) -> (i32, i32, i32) {
    %c0_i32 = arith.constant 0 : i32
    %c0_i32_0 = arith.constant 0 : i32
    %c0_i32_1 = arith.constant 0 : i32
    return %arg0, %c0_i32, %c0_i32_0 : i32, i32, i32
  }
  func.func @transform_1(%arg0: i32) -> (i32, i32) {
    %c0_i32 = arith.constant 0 : i32
    %c0_i32_0 = arith.constant 0 : i32
    %c0_i32_1 = arith.constant 0 : i32
    return %c0_i32, %c0_i32_0 : i32, i32
  }
  func.func @transform_2(%arg0: i32) -> (i32, i32) {
    %c0_i32 = arith.constant 0 : i32
    %c0_i32_0 = arith.constant 0 : i32
    %c0_i32_1 = arith.constant 0 : i32
    return %c0_i32, %c0_i32_0 : i32, i32
  }
  func.func @transform_3(%arg0: i32) -> (i32, i32) {
    %c0_i32 = arith.constant 0 : i32
    %c0_i32_0 = arith.constant 0 : i32
    %c0_i32_1 = arith.constant 0 : i32
    return %c0_i32, %c0_i32_0 : i32, i32
  }
  func.func @transform_4(%arg0: i32) -> (i32, i32) {
    %c0_i32 = arith.constant 0 : i32
    %c0_i32_0 = arith.constant 0 : i32
    %c0_i32_1 = arith.constant 0 : i32
    return %c0_i32, %c0_i32_0 : i32, i32
  }
  func.func @transform_5(%arg0: i32) -> (i32, i32) {
    %c0_i32 = arith.constant 0 : i32
    %c0_i32_0 = arith.constant 0 : i32
    %c0_i32_1 = arith.constant 0 : i32
    return %c0_i32, %c0_i32_0 : i32, i32
  }
  func.func @transform_6(%arg0: i32) -> (i32, i32) {
    %c0_i32 = arith.constant 0 : i32
    %c0_i32_0 = arith.constant 0 : i32
    %c0_i32_1 = arith.constant 0 : i32
    return %c0_i32, %c0_i32_0 : i32, i32
  }
  func.func @transform_7(%arg0: i32) -> (i32, i32) {
    %c0_i32 = arith.constant 0 : i32
    %c0_i32_0 = arith.constant 0 : i32
    %c0_i32_1 = arith.constant 0 : i32
    return %c0_i32, %c0_i32_0 : i32, i32
  }
  func.func @transform_8(%arg0: i32) -> (i32, i32, i32) {
    %c0_i32 = arith.constant 0 : i32
    %c0_i32_0 = arith.constant 0 : i32
    %c0_i32_1 = arith.constant 0 : i32
    return %arg0, %c0_i32, %c0_i32_0 : i32, i32, i32
  }
}

</mosaic_0001>

<bundles_post_ra>
// kernel: tpu_custom_call.1
= control target key start
LH: loop header
LB: loop body
LE: loop exit
PB: predicated region body
PF: predicated region fallthrough
CT: control target
= control target key end

     0   :  { %13 = vsyncpa [#allocation3], 0  ;;  %s1414_s0 = inlined_call_operand.hbm [shape: f32[2,4,256], index: 0, kind: input, shape index: {}]   ;;  %s1415_s1 = inlined_call_operand.vmem [shape: f32[9,256], index: 1, kind: input, shape index: {}]   ;;  %s1416_s2 = inlined_call_operand.vmem [shape: f32[8,4], index: 2, kind: input, shape index: {}]   ;;  %s1417_s3 = inlined_call_operand.vmem [shape: f32[8,1], index: 3, kind: input, shape index: {}]   ;;  %s1418_s4 = inlined_call_operand.vmem [shape: f32[8,9], index: 4, kind: input, shape index: {}]   ;;  %s1419_s5 = inlined_call_operand.vmem [shape: f32[8,1], index: 5, kind: input, shape index: {}]   ;;  %s1420_s6 = inlined_call_operand.vmem [shape: f32[4,8], index: 6, kind: input, shape index: {}]   ;;  %s1421_s7 = inlined_call_operand.vmem [shape: f32[4,1], index: 7, kind: input, shape index: {}]   ;;  %s1422_s8 = inlined_call_operand.hbm [shape: f32[2,4,256], index: 8, kind: output, shape index: {}]  }
   0x1   :  { %15 = vsyncpa [#allocation3 + $0x1], 0 }
   0x2   :  { %16 = vsyncpa [#allocation4], 0 }
   0x3   :  { %18 = vsyncpa [#allocation4 + $0x1], 0  ;;  %s1134_s27 = smov 0   ;;  %s1136_s28 = smov 0  }
   0x4   :  { %s1138_s29 = smov 0   ;;  %s1140_s30 = smov 0  }
   0x5 LB: > { %s1155_s9 = sadd.s32 4294967295, %s1067_s30   ;;  %s872_s10 = sadd.s32 4294967294, %s1067_s30   ;;  %s1067_s30 = sphi %s1140_s30, %s1441_s30   ;;  %s1063_s29 = sphi %s1138_s29, %s1440_s29   ;;  %s1059_s28 = sphi %s1136_s28, %s1439_s28   ;;  %s1055_s27 = sphi %s1134_s27, %s1438_s27  }
   0x6   : > { %s1159_s11 = sadd.s32 1, %s1067_s30   ;;  %s31_s12 = sadd.s32 1, %s1063_s29 }
   0x7   : > { %s28_s13 = ssub.s32 %s1067_s30, %s1159_s11  ;;  %p38_p0 = scmp.ne.s32.totalorder %s1063_s29, %s1059_s28 }
   0x8   : > { %p29_p1 = scmp.eq.s32.totalorder %s28_s13, 0  ;;  %p39_p2 = scmp.eq.s32.totalorder %s1067_s30, 0 }
   0x9   : > { %p44_p3 = scmp.ne.s32.totalorder %s1059_s28, %s1055_s27  ;;  %p45_p4 = scmp.eq.s32.totalorder %s1155_s9, 0 }
   0xa   : > { %s1171_s14 = scalar_select %p29_p1, %s1063_s29, %s31_s12  }
   0xb   : > { %p1173_p5 = por %p39_p2, %p38_p0  ;;  %p1177_p6 = por %p45_p4, %p44_p3 }
   0xc   : > { %1425 = sst [smem:[#allocation8_spill]] %s1171_s14  ;;  %p215_p7 = scmp.eq.s32.totalorder %s1155_s9, 1 }
   0xd   : > { %s1427_s16 = scalar_select %p1177_p6, 1, 0 }
   0xe   : > { %p221_p8 = scmp.eq.s32.totalorder %s872_s10, 1  ;;  %p911_p10 = scmp.lt.s32.totalorder %s1067_s30, 2 }
   0xf   : > { %p1184_p11 = por %p215_p7, %p38_p0  ;;  %s262_s19 = sand.u32 1, %s1063_s29  }
  0x10   : > { %p1188_p12 = por %p221_p8, %p44_p3  ;;  %s897_s20 = sshll.u32 %s1067_s30, 7 }
  0x11   : > { %s1428_s17 = scalar_select %p1184_p11, 1, 0 }
  0x12   : > { %s1429_s18 = scalar_select %p1188_p12, 1, 0 }
  0x13   : > { %s875_s21 = sshll.u32 %s262_s19, 3  ;;  %s1197_s24 = scalar_lea.hbm %s1414_s0, %s897_s20 }
  0x14   : > { %s266_s25 = scalar_lea.vmem [#allocation2], %s875_s21  ;;  %p1201_p13 = pnand %p911_p10, %p1173_p5 }
  0x15   : > { %s274_s26 = sshll.u32 %s266_s25, 4  ;;  %s263_s12 = scalar_lea.sflag [#allocation3], %s262_s19  ;;  %s1205_s26 = int_to_ptr.vmem [resolvable:$true] %s274_s26 }
  0x16   : > { %s975_s13 = scalar_lea.hbm %s1197_s24, 128  ;;  %p977_p3 = pneg %p1201_p13 }
  0x17   : > { %p976_p2 = scmp.ne.s32.totalorder %s1197_s24, %s975_s13  ;;  %s980_s15 = scalar_lea.hbm %s1414_s0, 256 }
  0x18   : > { %p981_p5 = scmp.lt.s32.totalorder %s1197_s24, %s1414_s0  ;;  %p982_p8 = scmp.lt.s32.totalorder %s980_s15, %s975_s13 }
  0x19   : > { %p978_p4 = pnand %p977_p3, %p976_p2 }
  0x1a   : > { %p983_p10 = por %p982_p8, %p981_p5 }
  0x1b   : > { %p979_p7 = pneg %p978_p4 }
  0x1d   : > { %p984_p9 = pnand %p983_p10, %p979_p7 }
  0x1f   : > { %987 = shalt.err (!%p984_p9)
}
  0x20   : > { %s988_s19 = scalar_lea.vmem %s1205_s26, 128  ;;  %s1069_s25 = smov [#allocation2]  }
  0x21   : > { %p989_p0 = scmp.ne.s32.totalorder %s1205_s26, %s988_s19  ;;  %s993_s14 = sshll.u32 %s1069_s25, 4  ;;  %s994_s14 = int_to_ptr.vmem [resolvable:$false] %s993_s14 }
  0x22   : > { %s995_s20 = scalar_lea.vmem %s994_s14, 256  ;;  %p996_p4 = scmp.lt.s32.totalorder %s1205_s26, %s994_s14 }
  0x23   : > { %p991_p1 = pnand %p989_p0, %p977_p3  ;;  %p997_p12 = scmp.lt.s32.totalorder %s995_s20, %s988_s19 }
  0x25   : > { %p992_p2 = pneg %p991_p1  ;;  %p998_p11 = por %p997_p12, %p996_p4 }
  0x27   : > { %p999_p6 = pnand %p998_p11, %p992_p2 }
  0x29   : > { %1002 = shalt.err (!%p999_p6)
}
  0x2a   : > { %906 = dma.hbm_to_vmem [thread:$0]  (!%p1201_p13), %s1197_s24, 128, %s1205_s26, %s263_s12  }
  0x2b   : > { %p1431_p9 = scmp.lt.s32.totalorder %s1067_s30, 3  ;;  %p1432_p7 = scmp.ge.s32.totalorder %s1067_s30, 1 }
  0x2d   : > { %p280_p0 = pnand %p1432_p7, %p1431_p9 }
  0x2e   : > { %s1232_s13 = sand.u32 (!%p280_p0), 1, %s1059_s28   ;;  %p1433_p6 = scmp.ne.s32.totalorder (!%p280_p0), %s1427_s16, 0 }
  0x2f   : > { %283 = sbr.rel (%p280_p0) target bundleno = 638 (0x27e), region = 52  ;;  %s879_s14 = sshll.u32 (!%p280_p0), %s1232_s13, 3 }
  0x30   : > { %s286_s21 = scalar_lea.sflag (!%p280_p0), [#allocation3], %s1232_s13  ;;  %s289_s10 = scalar_lea.vmem (!%p280_p0), [#allocation2], %s879_s14 }
  0x34   : > { %1046 = dma.done.wait (%p1433_p6), %s286_s21, 128  }
  0x35   : > { %1048 = vsyncadd (%p1433_p6), %s286_s21, 4294967168  ;;  %v1070_v0 = vmov 0.0   ;;  %v1071_v1 = vmov 0   ;;  %v1072_v2 = vmov 1   ;;  %v1243_v3 = vld [vmem:[%s289_s10] sm:$0xff]  ;;  %vm336_vm0 = vcmask 1043456  }
  0x36   : > { %405 = vmatprep.mubr.f32.mxu0 %v1070_v0  ;;  %963 = vset.pattern.permute.xlu0 %v1071_v1  ;;  %v324_v4 = vld [vmem:[%s1417_s3] sm:$0xff]  ;;  %v1250_v5 = vcombine.high %v1243_v3, %v1243_v3  ;;  %vm332_vm1 = vcmask 31744   ;;  %v1073_v8 = vmov 2   ;;  %v1074_v9 = vmov 3   ;;  %s1080_s23 = smov 15   ;;  %s1081_s19 = smov 17  }
  0x37   : > { %964 = vset.pattern.permute.xlu1 %v1072_v2  ;;  %772 = vmatprep.mubr.f32.mxu1 %v1070_v0  ;;  %v440_v6 = vld [vmem:[%s1418_s4] sm:$0xff]  ;;  %v1075_v10 = vmov 5   ;;  %v1076_v11 = vmov 4   ;;  %v1077_v12 = vmov 6   ;;  %v1078_v13 = vmov 7   ;;  %s1082_s25 = smov 1  }
  0x38   : > { %327 = vperm.xlu0 %963, %v324_v4   ;;  %v323_v7 = vld [vmem:[%s1416_s2] sm:$0xff]  ;;  %474 = vperm.xlu1 %964, %v440_v6   ;;  %v1079_v14 = vmov 8   ;;  %s1083_s20 = smov 16   ;;  %s1084_s21 = smov 127   ;;  %v428_v36 = vlaneseq  ;;  %vm421_vm2 = vcmask 138240   ;;  %vm486_vm3 = vcmask 121856  }
  0x39   : > { %881 = vmatprep.subr.msk.mxu0 %vm336_vm0, %v1250_v5  ;;  %s1085_s10 = smov 113   ;;  %s1086_s24 = smov 112   ;;  %v687_v22 = vld [vmem:[%s1419_s5] sm:$0xff]  ;;  %vm453_vm4 = vcmask 130048   ;;  %vm519_vm5 = vcmask 7168   ;;  %vm559_vm6 = vcmask 1039360  }
  0x3a   : > { %882 = vmatpush1.msk.msra.mxu0 %vm336_vm0, %v1243_v3  ;;  %s1087_s12 = smov 111   ;;  %v698_v23 = vld [vmem:[%s1421_s7] sm:$0xf]  ;;  %v429_v38 = vshrl.u32 %v428_v36, 7  ;;  %vm592_vm7 = vcmask 924672   ;;  %vm625_vm8 = vcmask 916480  }
  0x3b   : > { %883 = vmatmul.mubr.msk.f32.vlgmr.msra.gmra.mxu0 %vm332_vm1, %v323_v7  ;;  %v885_v43 = vld [vmem:[%s1415_s1 + $0x2] ss:$8 sm:$0x3]  ;;  %v426_v44 = vld [vmem:[%s1415_s1] ss:$8 sm:$0x3] }
  0x3c   : > { %443 = vperm.xlu0 %963, %v440_v6   ;;  %965 = vset.pattern.permute.xlu1 %v1073_v8  ;;  %v1304_v41 = vsub.s32 0, %v429_v38  ;;  %v1306_v42 = vsub.s32 1, %v429_v38  ;;  %v884_v46 = vld [vmem:[%s1415_s1 + $0x1] ss:$8 sm:$0x3]  ;;  %vm658_vm9 = vcmask 908288  }
  0x3d   : > { %507 = vperm.xlu1 %965, %v440_v6   ;;  %v886_v58 = vld [vmem:[%s1415_s1 + $0x3] ss:$8 sm:$0x3]  ;;  %vm704_vm10 = vcmask 64512   ;;  %s321_s26 = scalar_lea.vmem [#allocation5], %s879_s14  ;;  %p1434_p12 = scmp.ne.s32.totalorder %s1428_s17, 0 }
  0x3e   : > { %v497_v47 = vrot.slane %v885_v43, %v1304_v41  ;;  %v431_v48 = vrot.slane %v426_v44, %v1304_v41  ;;  %v435_v49 = vrot.slane %v426_v44, %v1306_v42  ;;  %v501_v51 = vrot.slane %v885_v43, %v1306_v42  ;;  %s802_s16 = sshll.u32 %s321_s26, 4  ;;  %s803_s16 = int_to_ptr.vmem [resolvable:$true] %s802_s16 }
  0x3f   : > { %v464_v56 = vrot.slane %v884_v46, %v1304_v41  ;;  %v468_v57 = vrot.slane %v884_v46, %v1306_v42  ;;  %v534_v7 = vrot.slane %v886_v58, %v1306_v42 }
  0x40   : > { %966 = vset.pattern.permute.xlu0 %v1074_v9 }
  0x41   : > { %540 = vperm.xlu0 %966, %v440_v6   ;;  %968 = vset.pattern.permute.xlu1 %v1075_v10 }
  0x42   : > { %581 = vperm.xlu1 %968, %v440_v6  }
  0x45   : > { %967 = vset.pattern.permute.xlu0 %v1076_v11 }
  0x46   : > { %548 = vperm.xlu0 %967, %v440_v6   ;;  %969 = vset.pattern.permute.xlu1 %v1077_v12 }
  0x47   : > { %614 = vperm.xlu1 %969, %v440_v6  }
  0x4a   : > { %970 = vset.pattern.permute.xlu0 %v1078_v13 }
  0x4b   : > { %647 = vperm.xlu0 %970, %v440_v6   ;;  %973 = vset.pattern.permute.xlu1 %v1071_v1 }
  0x4f   : > { %971 = vset.pattern.permute.xlu0 %v1079_v14 }
  0xb3   : > { %v328_v15 = vpop.permute.xlu0 %327  ;;  %v475_v24 = vpop.permute.xlu1 %474 }
  0xb7   : > { %v444_v25 = vpop.permute.xlu0 %443 }
  0xb8   : > { %v508_v26 = vpop.permute.xlu1 %507 }
  0xbc   : > { %v1288_v27 = vpop.permute.xlu0 %540 }
  0xbd   : > { %v1290_v28 = vpop.permute.xlu1 %581 }
  0xc1   : > { %v1292_v29 = vpop.permute.xlu0 %548 }
  0xc2   : > { %v1294_v30 = vpop.permute.xlu1 %614 }
  0xc6   : > { %v1296_v31 = vpop.permute.xlu0 %647 }
  0xfb   : > { %v407_v16 = vpop.f32.mrf.mxu0 }
  0xfc   : > { %v408_v17 = vadd.f32 %v407_v16, %v328_v15 }
  0xfd   : > { %v409_v19 = vpop.f32.mrf.mxu0 }
  0xfe   : > { %v1261_v18 = vmax.f32 %v408_v17, 0.0  ;;  %v410_v20 = vadd.f32 %v409_v19, %v328_v15  ;;  %v887_v17 = vld [vmem:[%s1415_s1 + $0x5] ss:$8 sm:$0x3] }
  0xff   : > { %v571_v36 = vrot.slane %v887_v17, %v1304_v41  ;;  %v575_v38 = vrot.slane %v887_v17, %v1306_v42 }
 0x100   : > { %484 = vrot.lane.b32.xlu1 %v1261_v18, %s1080_s23  ;;  %419 = vrot.lane.b32.xlu0 %v1261_v18, %s1081_s19  ;;  %v1269_v21 = vmax.f32 %v410_v20, 0.0 }
 0x104   : > { %517 = vrot.lane.b32.xlu1 %v1261_v18, %s1082_s25  ;;  %451 = vrot.lane.b32.xlu0 %v1261_v18, %s1083_s20 }
 0x108   : > { %555 = vrot.lane.b32.xlu1 %v1261_v18, %s1084_s21  ;;  %588 = vrot.lane.b32.xlu0 %v1261_v18, %s1085_s10 }
 0x10c   : > { %621 = vrot.lane.b32.xlu1 %v1261_v18, %s1086_s24  ;;  %481 = vrot.lane.b32.xlu0 %v1269_v21, %s1080_s23  ;;  %s788_s23 = scalar_lea.sflag [#allocation4], %s1232_s13 }
 0x110   : > { %415 = vrot.lane.b32.xlu1 %v1269_v21, %s1081_s19  ;;  %557 = vrot.lane.b32.xlu0 %v1269_v21, %s1084_s21  ;;  %s1003_s19 = scalar_lea.vmem %s803_s16, 128 }
 0x111   : > { %p1004_p11 = scmp.ne.s32.totalorder %s803_s16, %s1003_s19 }
 0x113   : > { %p1005_p13 = pnand %p1004_p11, %p1434_p12 }
 0x114   : > { %448 = vrot.lane.b32.xlu1 %v1269_v21, %s1083_s20  ;;  %680 = vperm.xlu0 %971, %v440_v6   ;;  %v530_v6 = vrot.slane %v886_v58, %v1304_v41 }
 0x115   : > { %p1006_p1 = pneg %p1005_p13 }
 0x118   : > { %514 = vrot.lane.b32.xlu1 %v1269_v21, %s1082_s25  ;;  %972 = vset.pattern.permute.xlu0 %v1071_v1 }
 0x119   : > { %690 = vperm.xlu0 %972, %v687_v22  }
 0x11c   : > { %654 = vrot.lane.b32.xlu1 %v1261_v18, %s1087_s12 }
 0x120   : > { %590 = vrot.lane.b32.xlu1 %v1269_v21, %s1085_s10 }
 0x124   : > { %623 = vrot.lane.b32.xlu1 %v1269_v21, %s1086_s24  ;;  %s898_s24 = sshll.u32 %s1155_s9, 7  ;;  %s1088_s9 = smov [#allocation5]  }
 0x125   : > { %s800_s22 = scalar_lea.hbm %s1422_s8, %s898_s24  ;;  %s1007_s14 = sshll.u32 %s1088_s9, 4  ;;  %s1008_s14 = int_to_ptr.vmem [resolvable:$false] %s1007_s14 }
 0x126   : > { %s1009_s25 = scalar_lea.vmem %s1008_s14, 256  ;;  %p1010_p3 = scmp.lt.s32.totalorder %s803_s16, %s1008_s14 }
 0x127   : > { %p1011_p5 = scmp.lt.s32.totalorder %s1009_s25, %s1003_s19 }
 0x128   : > { %656 = vrot.lane.b32.xlu1 %v1269_v21, %s1087_s12 }
 0x129   : > { %p1012_p8 = por %p1011_p5, %p1010_p3 }
 0x12b   : > { %p1013_p10 = pnand %p1012_p8, %p1006_p1 }
 0x12c   : > { %701 = vperm.xlu1 %973, %v698_v23  }
 0x172   : > { %v485_v32 = vpop.permute.xlu1 %484  ;;  %v420_v33 = vpop.permute.xlu0 %419 }
 0x176   : > { %v518_v34 = vpop.permute.xlu1 %517  ;;  %v452_v35 = vpop.permute.xlu0 %451 }
 0x17a   : > { %v1298_v37 = vpop.permute.xlu1 %555  ;;  %v1300_v39 = vpop.permute.xlu0 %588 }
 0x17e   : > { %v1302_v40 = vpop.permute.xlu1 %621  ;;  %v482_v45 = vpop.permute.xlu0 %481 }
 0x17f   : > { %v487_v54 = vsel %vm486_vm3, %v485_v32, %v482_v45  ;;  %v490_v55 = vsel %vm486_vm3, %v482_v45, %v485_v32 }
 0x180   : > { %v504_v62 = vmul.f32 %v497_v47, %v490_v55  ;;  %v505_v63 = vmul.f32 %v501_v51, %v487_v54  ;;  %v551_v47 = vmul.f32 %v1292_v29, %v1261_v18  ;;  %v890_v18 = vld [vmem:[%s1415_s1 + $0x10] ss:$8 sm:$0x3] }
 0x182   : > { %v416_v50 = vpop.permute.xlu1 %415  ;;  %v510_v13 = vmul.f32 %v508_v26, %v504_v62  ;;  %v511_v14 = vmul.f32 %v508_v26, %v505_v63  ;;  %v558_v32 = vpop.permute.xlu0 %557 }
 0x183   : > { %v422_v52 = vsel %vm421_vm2, %v420_v33, %v416_v50  ;;  %v425_v53 = vsel %vm421_vm2, %v416_v50, %v420_v33  ;;  %v560_v43 = vsel %vm559_vm6, %v1298_v37, %v558_v32  ;;  %v564_v44 = vsel %vm559_vm6, %v558_v32, %v1298_v37 }
 0x184   : > { %v438_v59 = vmul.f32 %v431_v48, %v425_v53  ;;  %v439_v60 = vmul.f32 %v435_v49, %v422_v52  ;;  %v552_v48 = vmul.f32 %v1292_v29, %v1269_v21  ;;  %v578_v52 = vmul.f32 %v571_v36, %v560_v43 }
 0x185   : > { %v579_v37 = vmul.f32 %v575_v38, %v564_v44 }
 0x186   : > { %v449_v61 = vpop.permute.xlu1 %448  ;;  %v446_v8 = vmul.f32 %v444_v25, %v438_v59  ;;  %v447_v9 = vmul.f32 %v444_v25, %v439_v60  ;;  %v670_v60 = vrot.slane %v890_v18, %v1304_v41 }
 0x187   : > { %v454_v0 = vsel %vm453_vm4, %v452_v35, %v449_v61  ;;  %v457_v1 = vsel %vm453_vm4, %v449_v61, %v452_v35  ;;  %v674_v61 = vrot.slane %v890_v18, %v1306_v42  ;;  %v585_v62 = vmul.f32 %v1290_v28, %v579_v37 }
 0x188   : > { %v471_v2 = vmul.f32 %v464_v56, %v457_v1  ;;  %v472_v4 = vmul.f32 %v468_v57, %v454_v0 }
 0x18a   : > { %v477_v10 = vmul.f32 %v475_v24, %v471_v2  ;;  %v478_v11 = vmul.f32 %v475_v24, %v472_v4  ;;  %v515_v12 = vpop.permute.xlu1 %514  ;;  %v888_v24 = vld [vmem:[%s1415_s1 + $0x6] ss:$8 sm:$0x3] }
 0x18b   : > { %v520_v15 = vsel %vm519_vm5, %v518_v34, %v515_v12  ;;  %v523_v16 = vsel %vm519_vm5, %v515_v12, %v518_v34  ;;  %v604_v45 = vrot.slane %v888_v24, %v1304_v41  ;;  %v608_v46 = vrot.slane %v888_v24, %v1306_v42 }
 0x18c   : > { %v479_v19 = vadd.f32 %v477_v10, %v446_v8  ;;  %v480_v20 = vadd.f32 %v478_v11, %v447_v9  ;;  %v537_v22 = vmul.f32 %v530_v6, %v523_v16  ;;  %v538_v23 = vmul.f32 %v534_v7, %v520_v15 }
 0x18e   : > { %v512_v25 = vadd.f32 %v510_v13, %v479_v19  ;;  %v513_v26 = vadd.f32 %v511_v14, %v480_v20  ;;  %v543_v33 = vmul.f32 %v1288_v27, %v537_v22  ;;  %v544_v34 = vmul.f32 %v1288_v27, %v538_v23  ;;  %v655_v35 = vpop.permute.xlu1 %654  ;;  %v889_v27 = vld [vmem:[%s1415_s1 + $0x7] ss:$8 sm:$0x3] }
 0x18f   : > { %v637_v57 = vrot.slane %v889_v27, %v1304_v41  ;;  %v641_v21 = vrot.slane %v889_v27, %v1306_v42  ;;  %v681_v7 = vpop.permute.xlu0 %680 }
 0x190   : > { %v545_v49 = vadd.f32 %v543_v33, %v512_v25  ;;  %v546_v50 = vadd.f32 %v544_v34, %v513_v26  ;;  %v697_v25 = vld [vmem:[%s1420_s6] sm:$0xf] }
 0x192   : > { %v591_v51 = vpop.permute.xlu1 %590  ;;  %v553_v29 = vadd.f32 %v551_v47, %v545_v49  ;;  %v554_v58 = vadd.f32 %v552_v48, %v546_v50 }
 0x193   : > { %v593_v53 = vsel %vm592_vm7, %v1300_v39, %v591_v51  ;;  %v597_v54 = vsel %vm592_vm7, %v591_v51, %v1300_v39  ;;  %v584_v39 = vmul.f32 %v1290_v28, %v578_v52 }
 0x194   : > { %v611_v55 = vmul.f32 %v604_v45, %v593_v53  ;;  %v612_v56 = vmul.f32 %v608_v46, %v597_v54  ;;  %v587_v28 = vadd.f32 %v585_v62, %v554_v58  ;;  %v691_v19 = vpop.permute.xlu0 %690 }
 0x195   : > { %v586_v9 = vadd.f32 %v584_v39, %v553_v29 }
 0x196   : > { %v624_v59 = vpop.permute.xlu1 %623  ;;  %v617_v1 = vmul.f32 %v1294_v30, %v611_v55  ;;  %v618_v2 = vmul.f32 %v1294_v30, %v612_v56 }
 0x197   : > { %v626_v63 = vsel %vm625_vm8, %v1302_v40, %v624_v59  ;;  %v630_v0 = vsel %vm625_vm8, %v624_v59, %v1302_v40 }
 0x198   : > { %v644_v4 = vmul.f32 %v637_v57, %v626_v63  ;;  %v645_v6 = vmul.f32 %v641_v21, %v630_v0  ;;  %v619_v13 = vadd.f32 %v617_v1, %v586_v9  ;;  %v620_v14 = vadd.f32 %v618_v2, %v587_v28 }
 0x19a   : > { %v650_v41 = vmul.f32 %v1296_v31, %v644_v4  ;;  %v651_v42 = vmul.f32 %v1296_v31, %v645_v6  ;;  %v657_v8 = vpop.permute.xlu1 %656 }
 0x19b   : > { %v659_v10 = vsel %vm658_vm9, %v655_v35, %v657_v8  ;;  %v663_v11 = vsel %vm658_vm9, %v657_v8, %v655_v35 }
 0x19c   : > { %v677_v12 = vmul.f32 %v670_v60, %v659_v10  ;;  %v678_v40 = vmul.f32 %v674_v61, %v663_v11  ;;  %v652_v16 = vadd.f32 %v650_v41, %v619_v13  ;;  %v653_v17 = vadd.f32 %v651_v42, %v620_v14 }
 0x19e   : > { %v683_v15 = vmul.f32 %v681_v7, %v677_v12  ;;  %v684_v30 = vmul.f32 %v681_v7, %v678_v40 }
 0x1a0   : > { %v685_v20 = vadd.f32 %v683_v15, %v652_v16  ;;  %v686_v22 = vadd.f32 %v684_v30, %v653_v17 }
 0x1a2   : > { %v693_v31 = vadd.f32 %v691_v19, %v685_v20  ;;  %v694_v23 = vadd.f32 %v691_v19, %v686_v22 }
 0x1a4   : > { %v695_v32 = vmax.f32 %v693_v31, 0.0  ;;  %v696_v24 = vmax.f32 %v694_v23, 0.0 }
 0x1a6   : > { %738 = vmatprep.subr.mxu1 %v696_v24 }
 0x1a7   : > { %739 = vmatpush1.msra.mxu1 %v695_v32  ;;  %v702_v26 = vpop.permute.xlu1 %701 }
 0x1a8   : > { %891 = vmatmul.mubr.msk.f32.vlgmr.msra.gmra.mxu1 %vm704_vm10, %v697_v25 }
 0x268   : > { %v774_v33 = vpop.f32.mrf.mxu1 }
 0x269   : > { %v775_v34 = vadd.f32 %v774_v33, %v702_v26 }
 0x26a   : > { %v776_v35 = vpop.f32.mrf.mxu1 }
 0x26b   : > { %v777_v36 = vadd.f32 %v776_v35, %v702_v26  ;;  %v780_v38 = vadd.f32 %v775_v34, %v1243_v3 }
 0x26d   : > { %v781_v43 = vadd.f32 %v777_v36, %v1250_v5 }
 0x26f   : > { %v784_v44 = vcombine.low %v780_v38, %v781_v43 }
 0x271   : > { %786 = vst [vmem:[%s321_s26] sm:$0xff] %v784_v44 }
 0x272   : > { %1016 = shalt.err (!%p1013_p10)
}
 0x273   : > { %s1017_s20 = scalar_lea.hbm %s800_s22, 128  ;;  %s1021_s10 = scalar_lea.hbm %s1422_s8, 256 }
 0x274   : > { %p1018_p2 = scmp.ne.s32.totalorder %s800_s22, %s1017_s20  ;;  %p1022_p7 = scmp.lt.s32.totalorder %s800_s22, %s1422_s8 }
 0x275   : > { %p1023_p0 = scmp.lt.s32.totalorder %s1021_s10, %s1017_s20 }
 0x276   : > { %p1019_p4 = pnand %p1018_p2, %p1434_p12 }
 0x277   : > { %p1024_p6 = por %p1023_p0, %p1022_p7 }
 0x278   : > { %p1020_p9 = pneg %p1019_p4 }
 0x27a   : > { %p1025_p11 = pnand %p1024_p6, %p1020_p9 }
 0x27c   : > { %1028 = shalt.err (!%p1025_p11)
}
 0x27d   : > { %901 = dma.vmem_to_hbm [thread:$0]  (%p1434_p12), %s803_s16, 128, %s800_s22, %s788_s23  }
 0x27e PF: > { %s814_s12 = sand.u32 1, %s1055_s27   ;;  %p1435_p13 = scmp.ne.s32.totalorder %s1429_s18, 0 }
 0x27f   : > { %p1436_p1 = scmp.ge.s32.totalorder %s1067_s30, 2  ;;  %s815_s15 = scalar_lea.sflag [#allocation4], %s814_s12 }
 0x281   : > { %p908_p3 = pnand %p1436_p1, %p1435_p13 }
 0x283   : > { %p909_p5 = pneg %p908_p3 }
 0x285   : > { %1050 = dma.done.wait (%p909_p5), %s815_s15, 128  }
 0x286   : > { %1052 = vsyncadd (%p909_p5), %s815_s15, 4294967168  ;;  %s1437_s19 = sld [smem:[#allocation8_spill]]  ;;  %p21_p8 = scmp.ge.s32.totalorder %s1159_s11, 4  }
 0x287   : > { %s1438_s27 = smov %s1059_s28  ;;  %s1439_s28 = smov %s1063_s29 }
 0x288   : > { %s1441_s30 = smov %s1159_s11  ;;  %23 = sbr.rel (!%p21_p8) target bundleno = 5 (0x5), region = 104 }
 0x28c   : > { %s1440_s29 = smov %s1437_s19 }
 0x28d   :  { %820 = vsyncpa [#allocation3], 1 }
 0x28e   :  { %822 = vsyncpa [#allocation3 + $0x1], 1 }
 0x28f   :  { %823 = vsyncpa [#allocation4], 1 }
 0x290   :  { %825 = vsyncpa [#allocation4 + $0x1], 1 }

</bundles_post_ra>
